<compile_context>
chip_gen: v7x
topology: tpu7x:2x2x1
jax: 0.10.0
libtpu: 0.0.40
codegen_flags: <defaults>
</compile_context>

<pallas_src>
import functools

import jax
import jax.numpy as jnp
from jax.experimental import pallas as pl
from jax.experimental.pallas import tpu as pltpu


def _round_up(x, m):
    return (x + m - 1) // m * m


# ---------------------------------------------------------------------------
# Fused kernel: encoder Linear -> (+embedding broadcast) -> decoder Linear -> fc
# All operands are single full-array VMEM blocks (shapes are small & padded to
# (8, 128) multiples); intermediates live in registers/VMEM only.
# ---------------------------------------------------------------------------
def _fused_transformer_kernel(B, T,
                              x_ref, enc_w_ref, enc_b_ref,
                              emb_ref, dec_w_ref, dec_b_ref,
                              fc_w_ref, fc_b_ref, o_ref):
    # --- encoder: [Menc, Kp](bf16) @ [Kp, Dp](bf16) + b, f32 accumulate ------
    enc = jnp.dot(x_ref[...], enc_w_ref[...],
                  preferred_element_type=jnp.float32) + enc_b_ref[...]    # [Menc, Dp] f32
    Dp = enc.shape[1]

    # --- decoder: token embedding + broadcast-add of enc over T -------------
    # (16,128) <-> (2,8,128) reshapes are tile-preserving (8x128 vregs intact).
    h3 = emb_ref[...].astype(jnp.float32).reshape(B, T, Dp) + enc[:B][:, None, :]
    h2 = h3.reshape(B * T, Dp).astype(jnp.bfloat16)
    dec = jnp.dot(h2, dec_w_ref[...],
                  preferred_element_type=jnp.float32) + dec_b_ref[...]    # [B*T, Vp] f32

    # --- fc: Linear(V -> V); dec never touches HBM ---------------------------
    out = jnp.dot(dec.astype(jnp.bfloat16), fc_w_ref[...],
                  preferred_element_type=jnp.float32) + fc_b_ref[...]     # [B*T, Vp] f32
    o_ref[...] = out


def transformer_forward(params, image, caption, tgt_vocab_size):
    B, C, H, W = image.shape
    T = caption.shape[1]
    K = C * H * W
    Kp = params["enc_w"].shape[0]      # padded contraction dim (multiple of 128)
    Dp = params["enc_w"].shape[1]      # padded d_model       (multiple of 128)
    Vp = params["fc_w"].shape[1]       # padded vocab          (multiple of 128)

    Menc = _round_up(max(B, 8), 8)     # sublane-pad the encoder rows
    Mdec = B * T
    assert Mdec % 8 == 0, "B*T must be a multiple of 8 (sublane) for this toy kernel"

    # Flatten NCHW image, pad rows/cols, cast to bf16 for the MXU.
    x_flat = image.reshape(B, K).astype(jnp.bfloat16)
    x_pad = jnp.zeros((Menc, Kp), jnp.bfloat16).at[:B, :K].set(x_flat)

    # Token embedding gather (XLA glue); rows land lane-dense at Dp.
    emb = jnp.take(params["embed"], caption, axis=0).reshape(Mdec, Dp)

    kernel = functools.partial(_fused_transformer_kernel, B, T)

    flops = 2 * (Menc * Kp * Dp + Mdec * Dp * Vp + Mdec * Vp * Vp)
    bytes_accessed = (x_pad.size * 2 + emb.size * 2
                      + params["enc_w"].size * 2 + params["enc_b"].size * 4
                      + params["dec_w"].size * 2 + params["dec_b"].size * 4
                      + params["fc_w"].size * 2 + params["fc_b"].size * 4
                      + Mdec * Vp * 4)

    vmem = pl.BlockSpec(memory_space=pltpu.MemorySpace.VMEM)
    out_padded = pl.pallas_call(
        kernel,
        out_shape=jax.ShapeDtypeStruct((Mdec, Vp), jnp.float32),
        in_specs=[vmem] * 8,
        out_specs=vmem,
        cost_estimate=pl.CostEstimate(flops=flops, transcendentals=0,
                                      bytes_accessed=bytes_accessed),
        compiler_params=pltpu.CompilerParams(vmem_limit_bytes=64 * 1024 * 1024),
    )(x_pad, params["enc_w"], params["enc_b"],
      emb, params["dec_w"], params["dec_b"],
      params["fc_w"], params["fc_b"])

    # Drop the zero-padded lanes and restore the module's [B, T, V] layout.
    return out_padded[:, :tgt_vocab_size].reshape(B, T, tgt_vocab_size)


def init_params(key, c, h, w, d_model, tgt_vocab_size):
    """Weights stored [in, out], lane dims zero-padded to 128 and cast to bf16
    once at init so the forward pass does no per-call cast/layout work."""
    ks = jax.random.split(key, 6)
    cin = c * h * w
    Kp = _round_up(cin, 128)
    Dp = _round_up(d_model, 128)
    Vp = _round_up(tgt_vocab_size, 128)
    scale = 0.02

    def pad2(a, rows, cols):
        out = jnp.zeros((rows, cols), a.dtype)
        return out.at[:a.shape[0], :a.shape[1]].set(a)

    enc_w = scale * jax.random.normal(ks[0], (cin, d_model), jnp.float32)
    enc_b = scale * jax.random.normal(ks[1], (d_model,), jnp.float32)
    embed = scale * jax.random.normal(ks[2], (tgt_vocab_size, d_model), jnp.float32)
    dec_w = scale * jax.random.normal(ks[3], (d_model, tgt_vocab_size), jnp.float32)
    dec_b = jnp.zeros((tgt_vocab_size,), jnp.float32)
    fc_w = scale * jax.random.normal(ks[4], (tgt_vocab_size, tgt_vocab_size), jnp.float32)
    fc_b = scale * jax.random.normal(ks[5], (tgt_vocab_size,), jnp.float32)

    return {
        "enc_w": pad2(enc_w, Kp, Dp).astype(jnp.bfloat16),
        "enc_b": pad2(enc_b.reshape(1, -1), 1, Dp),          # f32
        "embed": pad2(embed, tgt_vocab_size, Dp).astype(jnp.bfloat16),
        "dec_w": pad2(dec_w, Dp, Vp).astype(jnp.bfloat16),
        "dec_b": pad2(dec_b.reshape(1, -1), 1, Vp),          # f32
        "fc_w": pad2(fc_w, Vp, Vp).astype(jnp.bfloat16),
        "fc_b": pad2(fc_b.reshape(1, -1), 1, Vp),            # f32
    }


def ref_forward(p, image, caption, tgt_vocab_size):
    """Plain-JAX reference with identical numerics (same bf16 operands,
    f32 accumulation) operating on the padded params."""
    B, C, H, W = image.shape
    T = caption.shape[1]
    K = C * H * W
    Kp = p["enc_w"].shape[0]
    xf = jnp.zeros((B, Kp), jnp.bfloat16).at[:, :K].set(
        image.reshape(B, K).astype(jnp.bfloat16))
    enc = jnp.dot(xf, p["enc_w"], preferred_element_type=jnp.float32) + p["enc_b"]
    emb = jnp.take(p["embed"], caption, axis=0).astype(jnp.float32)
    h = emb + enc[:, None, :]
    h2 = h.reshape(B * T, -1).astype(jnp.bfloat16)
    dec = jnp.dot(h2, p["dec_w"], preferred_element_type=jnp.float32) + p["dec_b"]
    out = jnp.dot(dec.astype(jnp.bfloat16), p["fc_w"],
                  preferred_element_type=jnp.float32) + p["fc_b"]
    return out[:, :tgt_vocab_size].reshape(B, T, tgt_vocab_size)


if __name__ == "__main__":
    B, C, H, W = 2, 4, 16, 16          # image: NCHW
    T = 8                              # caption length
    d_model = 32
    tgt_vocab_size = 32

    key = jax.random.PRNGKey(0)
    k_img, k_cap, k_par = jax.random.split(key, 3)

    image = jax.random.normal(k_img, (B, C, H, W), jnp.float32)
    caption = jax.random.randint(k_cap, (B, T), 0, tgt_vocab_size, jnp.int32)
    params = init_params(k_par, C, H, W, d_model, tgt_vocab_size)

    fwd = jax.jit(transformer_forward, static_argnums=(3,))
    out = fwd(params, image, caption, tgt_vocab_size)
    out = jax.block_until_ready(out)

    ref = ref_forward(params, image, caption, tgt_vocab_size)
    assert out.shape == (B, T, tgt_vocab_size)
    assert jnp.allclose(out, ref, atol=2e-3, rtol=2e-3), float(
        jnp.max(jnp.abs(out - ref)))

    print("KERNEL_OK")
</pallas_src>

<mosaic_0001>
module attributes {stable_mosaic.version = 11 : i64} {
  func.func @_fused_transformer_kernel(%arg0: memref<8x1024xbf16, #tpu.memory_space<vmem>>, %arg1: memref<1024x128xbf16, #tpu.memory_space<vmem>>, %arg2: memref<1x128xf32, #tpu.memory_space<vmem>>, %arg3: memref<16x128xbf16, #tpu.memory_space<vmem>>, %arg4: memref<128x128xbf16, #tpu.memory_space<vmem>>, %arg5: memref<1x128xf32, #tpu.memory_space<vmem>>, %arg6: memref<128x128xbf16, #tpu.memory_space<vmem>>, %arg7: memref<1x128xf32, #tpu.memory_space<vmem>>, %arg8: memref<16x128xf32, #tpu.memory_space<vmem>>) attributes {dimension_semantics = [], scalar_prefetch = 0 : i64, scratch_operands = 0 : i64, tpu.core_type = #tpu.core_type<tc>} {
    %c0 = arith.constant 0 : index
    %c0_0 = arith.constant 0 : index
    %0 = vector.load %arg0[%c0, %c0_0] : memref<8x1024xbf16, #tpu.memory_space<vmem>>, vector<8x1024xbf16>
    %c0_1 = arith.constant 0 : index
    %c0_2 = arith.constant 0 : index
    %1 = vector.load %arg1[%c0_1, %c0_2] : memref<1024x128xbf16, #tpu.memory_space<vmem>>, vector<1024x128xbf16>
    %cst = arith.constant dense<0.000000e+00> : vector<8x128xf32>
    %2 = tpu.matmul %0, %1, %cst {dimension_numbers = #tpu.dot_dimension_numbers<[1], [0], [0], [1], [0, 0, 1, 1], [], []>} : vector<8x1024xbf16>, vector<1024x128xbf16>, vector<8x128xf32> -> vector<8x128xf32>
    %c0_3 = arith.constant 0 : index
    %c0_4 = arith.constant 0 : index
    %3 = vector.load %arg2[%c0_3, %c0_4] : memref<1x128xf32, #tpu.memory_space<vmem>>, vector<1x128xf32>
    %4 = vector.broadcast %3 : vector<1x128xf32> to vector<8x128xf32>
    %5 = arith.addf %2, %4 : vector<8x128xf32>
    %c0_5 = arith.constant 0 : index
    %c0_6 = arith.constant 0 : index
    %6 = vector.load %arg3[%c0_5, %c0_6] : memref<16x128xbf16, #tpu.memory_space<vmem>>, vector<16x128xbf16>
    %7 = arith.extf %6 : vector<16x128xbf16> to vector<16x128xf32>
    %8 = vector.shape_cast %7 : vector<16x128xf32> to vector<2x8x128xf32>
    %9 = vector.extract_strided_slice %5 {offsets = [0, 0], sizes = [2, 128], strides = [1, 1]} : vector<8x128xf32> to vector<2x128xf32>
    %10 = vector.shape_cast %9 : vector<2x128xf32> to vector<2x1x128xf32>
    %11 = vector.broadcast %10 : vector<2x1x128xf32> to vector<2x8x128xf32>
    %12 = arith.addf %8, %11 : vector<2x8x128xf32>
    %13 = vector.shape_cast %12 : vector<2x8x128xf32> to vector<16x128xf32>
    %14 = arith.truncf %13 : vector<16x128xf32> to vector<16x128xbf16>
    %c0_7 = arith.constant 0 : index
    %c0_8 = arith.constant 0 : index
    %15 = vector.load %arg4[%c0_7, %c0_8] : memref<128x128xbf16, #tpu.memory_space<vmem>>, vector<128x128xbf16>
    %cst_9 = arith.constant dense<0.000000e+00> : vector<16x128xf32>
    %16 = tpu.matmul %14, %15, %cst_9 {dimension_numbers = #tpu.dot_dimension_numbers<[1], [0], [0], [1], [0, 0, 1, 1], [], []>} : vector<16x128xbf16>, vector<128x128xbf16>, vector<16x128xf32> -> vector<16x128xf32>
    %c0_10 = arith.constant 0 : index
    %c0_11 = arith.constant 0 : index
    %17 = vector.load %arg5[%c0_10, %c0_11] : memref<1x128xf32, #tpu.memory_space<vmem>>, vector<1x128xf32>
    %18 = vector.broadcast %17 : vector<1x128xf32> to vector<16x128xf32>
    %19 = arith.addf %16, %18 : vector<16x128xf32>
    %20 = arith.truncf %19 : vector<16x128xf32> to vector<16x128xbf16>
    %c0_12 = arith.constant 0 : index
    %c0_13 = arith.constant 0 : index
    %21 = vector.load %arg6[%c0_12, %c0_13] : memref<128x128xbf16, #tpu.memory_space<vmem>>, vector<128x128xbf16>
    %cst_14 = arith.constant dense<0.000000e+00> : vector<16x128xf32>
    %22 = tpu.matmul %20, %21, %cst_14 {dimension_numbers = #tpu.dot_dimension_numbers<[1], [0], [0], [1], [0, 0, 1, 1], [], []>} : vector<16x128xbf16>, vector<128x128xbf16>, vector<16x128xf32> -> vector<16x128xf32>
    %c0_15 = arith.constant 0 : index
    %c0_16 = arith.constant 0 : index
    %23 = vector.load %arg7[%c0_15, %c0_16] : memref<1x128xf32, #tpu.memory_space<vmem>>, vector<1x128xf32>
    %24 = vector.broadcast %23 : vector<1x128xf32> to vector<16x128xf32>
    %25 = arith.addf %22, %24 : vector<16x128xf32>
    %c0_17 = arith.constant 0 : index
    %c0_18 = arith.constant 0 : index
    %26 = vector.load %arg8[%c0_17, %c0_18] : memref<16x128xf32, #tpu.memory_space<vmem>>, vector<16x128xf32>
    tpu.vector_store %arg8[%c0_17, %c0_18], %25 {strides = array<i32>} : memref<16x128xf32, #tpu.memory_space<vmem>>, vector<16x128xf32>,
    return
  }
}

</mosaic_0001>

<bundles_post_ra>
// kernel: transformer_forward.1
= control target key start
LH: loop header
LB: loop body
LE: loop exit
PB: predicated region body
PF: predicated region fallthrough
CT: control target
= control target key end

     0   :  { %13 = vsyncpa [#allocation3], 0  ;;  %s1885_s0 = inlined_call_operand.hbm [shape: bf16[8,1024], index: 0, kind: input, shape index: {}]   ;;  %s1886_s1 = inlined_call_operand.hbm [shape: bf16[1024,128], index: 1, kind: input, shape index: {}]   ;;  %s1887_s2 = inlined_call_operand.hbm [shape: f32[1,128], index: 2, kind: input, shape index: {}]   ;;  %s1888_s3 = inlined_call_operand.hbm [shape: bf16[16,128], index: 3, kind: input, shape index: {}]   ;;  %s1889_s4 = inlined_call_operand.hbm [shape: bf16[128,128], index: 4, kind: input, shape index: {}]   ;;  %s1890_s5 = inlined_call_operand.hbm [shape: f32[1,128], index: 5, kind: input, shape index: {}]   ;;  %s1891_s6 = inlined_call_operand.hbm [shape: bf16[128,128], index: 6, kind: input, shape index: {}]   ;;  %s1892_s7 = inlined_call_operand.hbm [shape: f32[1,128], index: 7, kind: input, shape index: {}]   ;;  %s1893_s8 = inlined_call_operand.hbm [shape: f32[16,128], index: 8, kind: output, shape index: {}]  }
   0x1   :  { %14 = vsyncpa [#allocation6], 0 }
   0x2   :  { %15 = vsyncpa [#allocation9], 0 }
   0x3   :  { %16 = vsyncpa [#allocation12], 0 }
   0x4   :  { %17 = vsyncpa [#allocation15], 0 }
   0x5   :  { %18 = vsyncpa [#allocation4], 0  ;;  %s1686_s27 = smov [#allocation5]   ;;  %s1476_s9 = scalar_lea.hbm %s1886_s1, 8192 }
   0x6   :  { %s34_s28 = sshll.u32 %s1686_s27, 4  ;;  %p1477_p0 = scmp.ne.s32.totalorder %s1886_s1, %s1476_s9  ;;  %s35_s28 = int_to_ptr.vmem [resolvable:$true] %s34_s28 }
   0x7   :  { %p1480_p1 = scmp.lt.u32.totalorder %s1476_s9, %s1886_s1 }
   0x9   :  { %p1482_p2 = pnand %p1480_p1, %p1477_p0 }
   0xb   :  { %1485 = shalt.err (!%p1482_p2)
}
   0xc   :  { %s1486_s14 = scalar_lea.vmem %s35_s28, 8192  ;;  %p1491_p4 = scmp.lt.s32.totalorder %s35_s28, %s35_s28 }
   0xd   :  { %p1487_p3 = scmp.ne.s32.totalorder %s35_s28, %s1486_s14  ;;  %p1492_p5 = scmp.lt.s32.totalorder %s1486_s14, %s1486_s14 }
   0xf   :  { %p1493_p6 = por %p1492_p5, %p1491_p4 }
  0x11   :  { %p1494_p7 = pnand %p1493_p6, %p1487_p3 }
  0x13   :  { %1497 = shalt.err (!%p1494_p7)
}
  0x14   :  { %s1687_s15 = smov 64   ;;  %s1688_s16 = smov 4  }
  0x15   :  { %40 = dma.hbm_to_vmem [thread:$0]  %s1886_s1, 8192, %s35_s28, [#allocation6], %s1687_s15, %s1687_s15, %s1688_s16  }
  0x16   :  { %s1689_s19 = smov [#allocation8]   ;;  %s1690_s21 = smov [#allocation11]  }
  0x17   :  { %s56_s20 = sshll.u32 %s1689_s19, 4  ;;  %s81_s22 = sshll.u32 %s1690_s21, 4  ;;  %s57_s20 = int_to_ptr.vmem [resolvable:$true] %s56_s20  ;;  %s82_s22 = int_to_ptr.vmem [resolvable:$true] %s81_s22 }
  0x18   :  { %s1498_s25 = scalar_lea.hbm %s1888_s3, 128 }
  0x19   :  { %p1499_p8 = scmp.ne.s32.totalorder %s1888_s3, %s1498_s25  ;;  %p1502_p9 = scmp.lt.u32.totalorder %s1498_s25, %s1888_s3 }
  0x1b   :  { %p1504_p10 = pnand %p1502_p9, %p1499_p8 }
  0x1d   :  { %1507 = shalt.err (!%p1504_p10)
}
  0x1e   :  { %s1508_s1 = scalar_lea.vmem %s57_s20, 128  ;;  %p1513_p12 = scmp.lt.s32.totalorder %s57_s20, %s57_s20 }
  0x1f   :  { %p1509_p11 = scmp.ne.s32.totalorder %s57_s20, %s1508_s1  ;;  %p1514_p13 = scmp.lt.s32.totalorder %s1508_s1, %s1508_s1 }
  0x21   :  { %p1515_p0 = por %p1514_p13, %p1513_p12 }
  0x23   :  { %p1516_p1 = pnand %p1515_p0, %p1509_p11 }
  0x25   :  { %1519 = shalt.err (!%p1516_p1)
}
  0x26   :  { %62 = dma.hbm_to_vmem [thread:$0]  %s1888_s3, 128, %s57_s20, [#allocation9], %s1687_s15, %s1687_s15, %s1688_s16  }
  0x27   :  { %s1520_s12 = scalar_lea.hbm %s1890_s5, 16 }
  0x28   :  { %p1521_p2 = scmp.ne.s32.totalorder %s1890_s5, %s1520_s12  ;;  %p1524_p3 = scmp.lt.u32.totalorder %s1520_s12, %s1890_s5 }
  0x2a   :  { %p1526_p4 = pnand %p1524_p3, %p1521_p2 }
  0x2c   :  { %1529 = shalt.err (!%p1526_p4)
}
  0x2d   :  { %s1530_s19 = scalar_lea.vmem %s82_s22, 16  ;;  %s1534_s21 = scalar_lea.vmem %s82_s22, 32 }
  0x2e   :  { %p1531_p5 = scmp.ne.s32.totalorder %s82_s22, %s1530_s19  ;;  %p1535_p6 = scmp.lt.s32.totalorder %s82_s22, %s82_s22 }
  0x2f   :  { %p1536_p7 = scmp.lt.s32.totalorder %s1534_s21, %s1530_s19 }
  0x31   :  { %p1537_p8 = por %p1536_p7, %p1535_p6 }
  0x33   :  { %p1538_p9 = pnand %p1537_p8, %p1531_p5 }
  0x35   :  { %1541 = shalt.err (!%p1538_p9)
}
  0x36   :  { %84 = dma.hbm_to_vmem [thread:$0]  %s1890_s5, 16, %s82_s22, [#allocation12]  }
  0x37   :  { %s1691_s23 = smov [#allocation2]   ;;  %s1692_s25 = smov [#allocation7]  }
  0x38   :  { %s25_s24 = sshll.u32 %s1691_s23, 4  ;;  %s47_s26 = sshll.u32 %s1692_s25, 4  ;;  %s26_s24 = int_to_ptr.vmem [resolvable:$true] %s25_s24  ;;  %s48_s26 = int_to_ptr.vmem [resolvable:$true] %s47_s26 }
  0x39   :  { %s1542_s30 = scalar_lea.hbm %s1885_s0, 512 }
  0x3a   :  { %p1543_p10 = scmp.ne.s32.totalorder %s1885_s0, %s1542_s30  ;;  %p1546_p11 = scmp.lt.u32.totalorder %s1542_s30, %s1885_s0 }
  0x3c   :  { %p1548_p12 = pnand %p1546_p11, %p1543_p10 }
  0x3e   :  { %1551 = shalt.err (!%p1548_p12)
}
  0x3f   :  { %s1552_s5 = scalar_lea.vmem %s26_s24, 512  ;;  %p1557_p0 = scmp.lt.s32.totalorder %s26_s24, %s26_s24 }
  0x40   :  { %p1553_p13 = scmp.ne.s32.totalorder %s26_s24, %s1552_s5  ;;  %p1558_p1 = scmp.lt.s32.totalorder %s1552_s5, %s1552_s5 }
  0x42   :  { %p1559_p2 = por %p1558_p1, %p1557_p0 }
  0x44   :  { %p1560_p3 = pnand %p1559_p2, %p1553_p13 }
  0x46   :  { %1563 = shalt.err (!%p1560_p3)
}
  0x47   :  { %28 = dma.hbm_to_vmem [thread:$0]  %s1885_s0, 512, %s26_s24, [#allocation3]  }
  0x48   :  { %s1564_s14 = scalar_lea.hbm %s1887_s2, 16 }
  0x49   :  { %p1565_p4 = scmp.ne.s32.totalorder %s1887_s2, %s1564_s14  ;;  %p1568_p5 = scmp.lt.u32.totalorder %s1564_s14, %s1887_s2 }
  0x4b   :  { %p1570_p6 = pnand %p1568_p5, %p1565_p4 }
  0x4d   :  { %1573 = shalt.err (!%p1570_p6)
}
  0x4e   :  { %s1574_s3 = scalar_lea.vmem %s48_s26, 16  ;;  %s1578_s20 = scalar_lea.vmem %s48_s26, 32 }
  0x4f   :  { %p1575_p7 = scmp.ne.s32.totalorder %s48_s26, %s1574_s3  ;;  %p1579_p8 = scmp.lt.s32.totalorder %s48_s26, %s48_s26 }
  0x50   :  { %p1580_p9 = scmp.lt.s32.totalorder %s1578_s20, %s1574_s3 }
  0x52   :  { %p1581_p10 = por %p1580_p9, %p1579_p8 }
  0x54   :  { %p1582_p11 = pnand %p1581_p10, %p1575_p7 }
  0x56   :  { %1585 = shalt.err (!%p1582_p11)
}
  0x57   :  { %50 = dma.hbm_to_vmem [thread:$0]  %s1887_s2, 16, %s48_s26, [#allocation6]  }
  0x58   :  { %s1693_s24 = smov [#allocation10]   ;;  %s1694_s27 = smov [#allocation13]  }
  0x59   :  { %s68_s25 = sshll.u32 %s1693_s24, 4  ;;  %s90_s29 = sshll.u32 %s1694_s27, 4  ;;  %s69_s25 = int_to_ptr.vmem [resolvable:$true] %s68_s25  ;;  %s91_s29 = int_to_ptr.vmem [resolvable:$true] %s90_s29 }
  0x5a   :  { %s1586_s28 = scalar_lea.hbm %s1889_s4, 1024 }
  0x5b   :  { %p1587_p12 = scmp.ne.s32.totalorder %s1889_s4, %s1586_s28  ;;  %p1590_p13 = scmp.lt.u32.totalorder %s1586_s28, %s1889_s4 }
  0x5d   :  { %p1592_p0 = pnand %p1590_p13, %p1587_p12 }
  0x5f   :  { %1595 = shalt.err (!%p1592_p0)
}
  0x60   :  { %s1596_s2 = scalar_lea.vmem %s69_s25, 1024  ;;  %p1601_p2 = scmp.lt.s32.totalorder %s69_s25, %s69_s25 }
  0x61   :  { %p1597_p1 = scmp.ne.s32.totalorder %s69_s25, %s1596_s2  ;;  %p1602_p3 = scmp.lt.s32.totalorder %s1596_s2, %s1596_s2 }
  0x63   :  { %p1603_p4 = por %p1602_p3, %p1601_p2 }
  0x65   :  { %p1604_p5 = pnand %p1603_p4, %p1597_p1 }
  0x67   :  { %1607 = shalt.err (!%p1604_p5)
}
  0x68   :  { %74 = dma.hbm_to_vmem [thread:$0]  %s1889_s4, 1024, %s69_s25, [#allocation9], %s1687_s15, %s1687_s15, %s1688_s16  }
  0x69   :  { %s1608_s14 = scalar_lea.hbm %s1891_s6, 1024 }
  0x6a   :  { %p1609_p6 = scmp.ne.s32.totalorder %s1891_s6, %s1608_s14  ;;  %p1612_p7 = scmp.lt.u32.totalorder %s1608_s14, %s1891_s6 }
  0x6c   :  { %p1614_p8 = pnand %p1612_p7, %p1609_p6 }
  0x6e   :  { %1617 = shalt.err (!%p1614_p8)
}
  0x6f   :  { %s1618_s3 = scalar_lea.vmem %s91_s29, 1024  ;;  %p1623_p10 = scmp.lt.s32.totalorder %s91_s29, %s91_s29 }
  0x70   :  { %p1619_p9 = scmp.ne.s32.totalorder %s91_s29, %s1618_s3  ;;  %p1624_p11 = scmp.lt.s32.totalorder %s1618_s3, %s1618_s3 }
  0x72   :  { %p1625_p12 = por %p1624_p11, %p1623_p10 }
  0x74   :  { %p1626_p13 = pnand %p1625_p12, %p1619_p9 }
  0x76   :  { %1629 = shalt.err (!%p1626_p13)
}
  0x77   :  { %96 = dma.hbm_to_vmem [thread:$0]  %s1891_s6, 1024, %s91_s29, [#allocation12], %s1687_s15, %s1687_s15, %s1688_s16  }
  0x78   :  { %s1695_s0 = smov [#allocation14]   ;;  %s1630_s27 = scalar_lea.hbm %s1892_s7, 16 }
  0x79   :  { %s103_s23 = sshll.u32 %s1695_s0, 4  ;;  %p1631_p0 = scmp.ne.s32.totalorder %s1892_s7, %s1630_s27  ;;  %s104_s23 = int_to_ptr.vmem [resolvable:$true] %s103_s23 }
  0x7a   :  { %p1634_p1 = scmp.lt.u32.totalorder %s1630_s27, %s1892_s7 }
  0x7c   :  { %p1636_p2 = pnand %p1634_p1, %p1631_p0 }
  0x7e   :  { %1639 = shalt.err (!%p1636_p2)
}
  0x7f   :  { %s1640_s10 = scalar_lea.vmem %s104_s23, 16  ;;  %s1644_s6 = scalar_lea.vmem %s104_s23, 32 }
  0x80   :  { %p1641_p3 = scmp.ne.s32.totalorder %s104_s23, %s1640_s10  ;;  %p1645_p4 = scmp.lt.s32.totalorder %s104_s23, %s104_s23 }
  0x81   :  { %p1646_p5 = scmp.lt.s32.totalorder %s1644_s6, %s1640_s10 }
  0x83   :  { %p1647_p6 = por %p1646_p5, %p1645_p4 }
  0x85   :  { %p1648_p7 = pnand %p1647_p6, %p1641_p3 }
  0x87   :  { %1651 = shalt.err (!%p1648_p7)
}
  0x88   :  { %106 = dma.hbm_to_vmem [thread:$0]  %s1892_s7, 16, %s104_s23, [#allocation15]  }
  0x89   :  { %1674 = dma.done.wait [#allocation3], 512  }
  0x8a   :  { %1675 = vsyncadd [#allocation3], 4294966784 }
  0x8b   :  { %1676 = dma.done.wait [#allocation6], 8208  }
  0x8c   :  { %1677 = vsyncadd [#allocation6], 4294959088 }
  0x8d   :  { %1678 = dma.done.wait [#allocation9], 1152  }
  0x8e   :  { %1679 = vsyncadd [#allocation9], 4294966144 }
  0x8f   :  { %1680 = dma.done.wait [#allocation12], 1040  }
  0x90   :  { %1681 = vsyncadd [#allocation12], 4294966256 }
  0x91   :  { %1682 = dma.done.wait [#allocation15], 16  }
  0x92   :  { %1683 = vsyncadd [#allocation15], 4294967280  ;;  %v1388_v0 = vld [vmem:[#allocation5 + $0x40] sm:$0xff]   ;;  %v1392_v4 = vld [vmem:[#allocation5 + $0x48] sm:$0xff]   ;;  %vm1697_vm0 = vmmov 0   ;;  %s1699_s7 = smov [#allocation16]  }
  0x93   :  { %v1389_v1 = vld [vmem:[#allocation5 + $0xc0] sm:$0xff]   ;;  %1226 = vmatprep.subr.bf16.mxu0 %v1388_v0  ;;  %v1393_v5 = vld [vmem:[#allocation5 + $0xc8] sm:$0xff]   ;;  %v1396_v8 = vld [vmem:[#allocation5 + $0x50] sm:$0xff]   ;;  %s1115_s29 = sshll.u32 %s1699_s7, 4  ;;  %s1116_s29 = int_to_ptr.vmem [resolvable:$true] %s1115_s29 }
  0x94   :  { %v1390_v2 = vld [vmem:[#allocation5] sm:$0xff]   ;;  %1248 = vmatprep.subr.bf16.mxu1 %v1389_v1  ;;  %v1394_v6 = vld [vmem:[#allocation5 + $0x8] sm:$0xff]   ;;  %v1397_v9 = vld [vmem:[#allocation5 + $0xd0] sm:$0xff]   ;;  %s1652_s5 = scalar_lea.vmem %s1116_s29, 256  ;;  %p1657_p9 = scmp.lt.s32.totalorder %s1116_s29, %s1116_s29 }
  0x95   :  { %v1391_v3 = vld [vmem:[#allocation5 + $0x80] sm:$0xff]   ;;  %1227 = vmatpush3.bf16.msra.mxu0 %v1390_v2  ;;  %v1395_v7 = vld [vmem:[#allocation5 + $0x88] sm:$0xff]   ;;  %v1398_v10 = vld [vmem:[#allocation5 + $0x10] sm:$0xff]   ;;  %p1653_p8 = scmp.ne.s32.totalorder %s1116_s29, %s1652_s5  ;;  %p1658_p10 = scmp.lt.s32.totalorder %s1652_s5, %s1652_s5 }
  0x96   :  { %1249 = vmatpush3.bf16.msra.mxu1 %v1391_v3  ;;  %1228 = vmatprep.subr.bf16.mxu0 %v1392_v4  ;;  %v1399_v11 = vld [vmem:[#allocation5 + $0x90] sm:$0xff]   ;;  %v1400_v12 = vld [vmem:[#allocation5 + $0x58] sm:$0xff]   ;;  %v1404_v16 = vld [vmem:[#allocation5 + $0x60] sm:$0xff]  }
  0x97   :  { %1250 = vmatprep.subr.bf16.mxu1 %v1393_v5  ;;  %v1401_v13 = vld [vmem:[#allocation5 + $0xd8] sm:$0xff]   ;;  %v1405_v17 = vld [vmem:[#allocation5 + $0xe0] sm:$0xff]   ;;  %v1408_v20 = vld [vmem:[#allocation5 + $0x68] sm:$0xff]   ;;  %p1659_p11 = por %p1658_p10, %p1657_p9 }
  0x98   :  { %v1402_v14 = vld [vmem:[#allocation5 + $0x18] sm:$0xff]   ;;  %v1406_v18 = vld [vmem:[#allocation5 + $0x20] sm:$0xff]   ;;  %v1409_v21 = vld [vmem:[#allocation5 + $0xe8] sm:$0xff]  }
  0x99   :  { %1229 = vmatpush3.bf16.msra.mxu0 %v1394_v6  ;;  %v1403_v15 = vld [vmem:[#allocation5 + $0x98] sm:$0xff]   ;;  %v1407_v19 = vld [vmem:[#allocation5 + $0xa0] sm:$0xff]   ;;  %v1410_v22 = vld [vmem:[#allocation5 + $0x28] sm:$0xff]   ;;  %p1660_p12 = pnand %p1659_p11, %p1653_p8 }
  0x9a   :  { %1251 = vmatpush3.bf16.msra.mxu1 %v1395_v7  ;;  %1230 = vmatprep.subr.bf16.mxu0 %v1396_v8  ;;  %v1411_v23 = vld [vmem:[#allocation5 + $0xa8] sm:$0xff]   ;;  %v1412_v24 = vld [vmem:[#allocation5 + $0x70] sm:$0xff]   ;;  %v1416_v28 = vld [vmem:[#allocation5 + $0x78] sm:$0xff]  }
  0x9b   :  { %1252 = vmatprep.subr.bf16.mxu1 %v1397_v9  ;;  %v1413_v25 = vld [vmem:[#allocation5 + $0xf0] sm:$0xff]   ;;  %v1417_v29 = vld [vmem:[#allocation5 + $0xf8] sm:$0xff]   ;;  %v132_v32 = vld [vmem:[#allocation2] sm:$0xff] }
  0x9c   :  { %v1414_v26 = vld [vmem:[#allocation5 + $0x30] sm:$0xff]   ;;  %v1418_v30 = vld [vmem:[#allocation5 + $0x38] sm:$0xff]   ;;  %v133_v33 = vld [vmem:[#allocation2 + $0x8] sm:$0xff]  ;;  %v1132_v34 = vcombine.low %v132_v32, %v132_v32  ;;  %v1133_v35 = vcombine.high %v132_v32, %v132_v32 }
  0x9d   :  { %1231 = vmatpush3.bf16.msra.mxu0 %v1398_v10  ;;  %v1415_v27 = vld [vmem:[#allocation5 + $0xb0] sm:$0xff]   ;;  %v1419_v31 = vld [vmem:[#allocation5 + $0xb8] sm:$0xff]   ;;  %v1134_v36 = vcombine.low %v133_v33, %v133_v33  ;;  %v1135_v37 = vcombine.high %v133_v33, %v133_v33  ;;  %v1424_v38 = vld [vmem:[#allocation5 + $0x140] sm:$0xff]  }
  0x9e   :  { %1253 = vmatpush3.bf16.msra.mxu1 %v1399_v11  ;;  %1232 = vmatprep.subr.bf16.mxu0 %v1400_v12  ;;  %v1425_v39 = vld [vmem:[#allocation5 + $0x1c0] sm:$0xff]   ;;  %v1428_v42 = vld [vmem:[#allocation5 + $0x148] sm:$0xff]   ;;  %v1432_v46 = vld [vmem:[#allocation5 + $0x150] sm:$0xff]  }
  0x9f   :  { %1254 = vmatprep.subr.bf16.mxu1 %v1401_v13  ;;  %715 = vmatprep.mubr.bf16.mxu0 %v1133_v35  ;;  %v1426_v40 = vld [vmem:[#allocation5 + $0x100] sm:$0xff]   ;;  %v1429_v43 = vld [vmem:[#allocation5 + $0x1c8] sm:$0xff]   ;;  %v1433_v47 = vld [vmem:[#allocation5 + $0x1d0] sm:$0xff]   ;;  %v1696_v13 = vmov 0.0  }
  0xa0   :  { %755 = vmatprep.mubr.bf16.mxu1 %v1135_v37  ;;  %v1427_v41 = vld [vmem:[#allocation5 + $0x180] sm:$0xff]   ;;  %v1430_v44 = vld [vmem:[#allocation5 + $0x108] sm:$0xff]   ;;  %v1434_v48 = vld [vmem:[#allocation5 + $0x110] sm:$0xff]  }
  0xa1   :  { %1233 = vmatpush3.bf16.msra.mxu0 %v1402_v14  ;;  %v1431_v45 = vld [vmem:[#allocation5 + $0x188] sm:$0xff]   ;;  %v1435_v49 = vld [vmem:[#allocation5 + $0x190] sm:$0xff]   ;;  %v1436_v50 = vld [vmem:[#allocation5 + $0x158] sm:$0xff]  }
  0xa2   :  { %1255 = vmatpush3.bf16.msra.mxu1 %v1403_v15  ;;  %1234 = vmatprep.subr.bf16.mxu0 %v1404_v16  ;;  %v1437_v51 = vld [vmem:[#allocation5 + $0x1d8] sm:$0xff]   ;;  %v1440_v54 = vld [vmem:[#allocation5 + $0x160] sm:$0xff]   ;;  %v1444_v58 = vld [vmem:[#allocation5 + $0x168] sm:$0xff]  }
  0xa3   :  { %1256 = vmatprep.subr.bf16.mxu1 %v1405_v17  ;;  %v1438_v52 = vld [vmem:[#allocation5 + $0x118] sm:$0xff]   ;;  %v1441_v55 = vld [vmem:[#allocation5 + $0x1e0] sm:$0xff]   ;;  %v1445_v59 = vld [vmem:[#allocation5 + $0x1e8] sm:$0xff]  }
  0xa4   :  { %v1439_v53 = vld [vmem:[#allocation5 + $0x198] sm:$0xff]   ;;  %v1442_v56 = vld [vmem:[#allocation5 + $0x120] sm:$0xff]   ;;  %v1446_v60 = vld [vmem:[#allocation5 + $0x128] sm:$0xff]  }
  0xa5   :  { %1235 = vmatpush3.bf16.msra.mxu0 %v1406_v18  ;;  %v1443_v57 = vld [vmem:[#allocation5 + $0x1a0] sm:$0xff]   ;;  %v1447_v61 = vld [vmem:[#allocation5 + $0x1a8] sm:$0xff]   ;;  %v1448_v62 = vld [vmem:[#allocation5 + $0x170] sm:$0xff]  }
  0xa6   :  { %1257 = vmatpush3.bf16.msra.mxu1 %v1407_v19  ;;  %1236 = vmatprep.subr.bf16.mxu0 %v1408_v20  ;;  %v1449_v63 = vld [vmem:[#allocation5 + $0x1f0] sm:$0xff]   ;;  %v1452_v2 = vld [vmem:[#allocation5 + $0x178] sm:$0xff]   ;;  %v1463_v16 = vld [vmem:[#allocation10 + $0x18] sm:$0xff]  }
  0xa7   :  { %1258 = vmatprep.subr.bf16.mxu1 %v1409_v21  ;;  %v1450_v0 = vld [vmem:[#allocation5 + $0x130] sm:$0xff]   ;;  %v1453_v3 = vld [vmem:[#allocation5 + $0x1f8] sm:$0xff]   ;;  %v1467_v20 = vld [vmem:[#allocation10 + $0x38] sm:$0xff]  }
  0xa8   :  { %v1451_v1 = vld [vmem:[#allocation5 + $0x1b0] sm:$0xff]   ;;  %v1454_v4 = vld [vmem:[#allocation5 + $0x138] sm:$0xff]  }
  0xa9   :  { %1237 = vmatpush3.bf16.msra.mxu0 %v1410_v22  ;;  %v1455_v5 = vld [vmem:[#allocation5 + $0x1b8] sm:$0xff]   ;;  %v134_v6 = vld [vmem:[#allocation2 + $0x10] sm:$0xff] }
  0xaa   :  { %1259 = vmatpush3.bf16.msra.mxu1 %v1411_v23  ;;  %1238 = vmatprep.subr.bf16.mxu0 %v1412_v24  ;;  %v1136_v7 = vcombine.low %v134_v6, %v134_v6  ;;  %v1137_v8 = vcombine.high %v134_v6, %v134_v6  ;;  %v135_v9 = vld [vmem:[#allocation2 + $0x18] sm:$0xff]  ;;  %v1460_v12 = vld [vmem:[#allocation10] sm:$0xff]  }
  0xab   :  { %1260 = vmatprep.subr.bf16.mxu1 %v1413_v25  ;;  %v1138_v10 = vcombine.low %v135_v9, %v135_v9  ;;  %v1139_v11 = vcombine.high %v135_v9, %v135_v9  ;;  %v1461_v14 = vld [vmem:[#allocation10 + $0x8] sm:$0xff]   ;;  %v1462_v15 = vld [vmem:[#allocation10 + $0x10] sm:$0xff]   ;;  %v1464_v17 = vld [vmem:[#allocation10 + $0x20] sm:$0xff]  }
  0xac   :  { %v1465_v18 = vld [vmem:[#allocation10 + $0x28] sm:$0xff]   ;;  %v1466_v19 = vld [vmem:[#allocation10 + $0x30] sm:$0xff]   ;;  %v1471_v24 = vld [vmem:[#allocation13 + $0x18] sm:$0xff]  }
  0xad   :  { %1239 = vmatpush3.bf16.msra.mxu0 %v1414_v26  ;;  %v1468_v21 = vld [vmem:[#allocation13] sm:$0xff]   ;;  %v1469_v22 = vld [vmem:[#allocation13 + $0x8] sm:$0xff]   ;;  %v1470_v23 = vld [vmem:[#allocation13 + $0x10] sm:$0xff]  }
  0xae   :  { %1261 = vmatpush3.bf16.msra.mxu1 %v1415_v27  ;;  %1240 = vmatprep.subr.bf16.mxu0 %v1416_v28  ;;  %v1472_v25 = vld [vmem:[#allocation13 + $0x20] sm:$0xff]   ;;  %v1473_v26 = vld [vmem:[#allocation13 + $0x28] sm:$0xff]   ;;  %v1204_v9 = vld [vmem:[#allocation11] ss:$0 sm:$0xff] }
  0xaf   :  { %1262 = vmatprep.subr.bf16.mxu1 %v1417_v29  ;;  %v1131_v29 = vld [vmem:[#allocation7] ss:$0 sm:$0xff] }
  0xb1   :  { %1241 = vmatpush3.bf16.msra.mxu0 %v1418_v30 }
  0xb2   :  { %1263 = vmatpush3.bf16.msra.mxu1 %v1419_v31  ;;  %1270 = vmatprep.subr.bf16.mxu0 %v1424_v38 }
  0xb3   :  { %1292 = vmatprep.subr.bf16.mxu1 %v1425_v39 }
  0xb4   :  { %716 = vmatmul.mubr.bf16.vlgmr.msra.gmra.mrb[0].mxu0 %v1132_v34 }
  0xb5   :  { %756 = vmatmul.mubr.bf16.vlgmr.msra.gmra.mrb[0].mxu1 %v1134_v36  ;;  %1271 = vmatpush3.bf16.msra.mxu0 %v1426_v40  ;;  %v1698_v40 = vmov 1966171168  }
  0xb6   :  { %1293 = vmatpush3.bf16.msra.mxu1 %v1427_v41  ;;  %1272 = vmatprep.subr.bf16.mxu0 %v1428_v42  ;;  %v849_v41 = vunpack.c.l.s4 %v1698_v40  ;;  %v851_v42 = vlaneseq }
  0xb7   :  { %1294 = vmatprep.subr.bf16.mxu1 %v1429_v43  ;;  %795 = vmatprep.mubr.bf16.mxu0 %v1137_v8  ;;  %v1475_v8 = vld [vmem:[#allocation13 + $0x38] sm:$0xff]  }
  0xb8   :  { %835 = vmatprep.mubr.bf16.mxu1 %v1139_v11 }
  0xb9   :  { %1273 = vmatpush3.bf16.msra.mxu0 %v1430_v44 }
  0xba   :  { %1295 = vmatpush3.bf16.msra.mxu1 %v1431_v45  ;;  %1274 = vmatprep.subr.bf16.mxu0 %v1432_v46  ;;  %v850_v45 = vunpack.c.0.s8 %v849_v41  ;;  %v852_v46 = vshrl.u32 %v851_v42, 7 }
  0xbb   :  { %1296 = vmatprep.subr.bf16.mxu1 %v1433_v47 }
  0xbd   :  { %1275 = vmatpush3.bf16.msra.mxu0 %v1434_v48 }
  0xbe   :  { %1297 = vmatpush3.bf16.msra.mxu1 %v1435_v49  ;;  %1276 = vmatprep.subr.bf16.mxu0 %v1436_v50 }
  0xbf   :  { %1298 = vmatprep.subr.bf16.mxu1 %v1437_v51 }
  0xc1   :  { %1277 = vmatpush3.bf16.msra.mxu0 %v1438_v52 }
  0xc2   :  { %1299 = vmatpush3.bf16.msra.mxu1 %v1439_v53  ;;  %1278 = vmatprep.subr.bf16.mxu0 %v1440_v54 }
  0xc3   :  { %1300 = vmatprep.subr.bf16.mxu1 %v1441_v55 }
  0xc5   :  { %1279 = vmatpush3.bf16.msra.mxu0 %v1442_v56  ;;  %v853_v56 = vsub.s32 %v850_v45, %v852_v46 }
  0xc6   :  { %1301 = vmatpush3.bf16.msra.mxu1 %v1443_v57  ;;  %1280 = vmatprep.subr.bf16.mxu0 %v1444_v58 }
  0xc7   :  { %1302 = vmatprep.subr.bf16.mxu1 %v1445_v59  ;;  %v872_v59 = vsub.s32 0, %v852_v46 }
  0xc9   :  { %1281 = vmatpush3.bf16.msra.mxu0 %v1446_v60  ;;  %v1223_v60 = vld [vmem:[#allocation8] sm:$0xff]  }
  0xca   :  { %1303 = vmatpush3.bf16.msra.mxu1 %v1447_v61  ;;  %1282 = vmatprep.subr.bf16.mxu0 %v1448_v62 }
  0xcb   :  { %1304 = vmatprep.subr.bf16.mxu1 %v1449_v63 }
  0xcd   :  { %1283 = vmatpush3.bf16.msra.mxu0 %v1450_v0 }
  0xce   :  { %1305 = vmatpush3.bf16.msra.mxu1 %v1451_v1  ;;  %1284 = vmatprep.subr.bf16.mxu0 %v1452_v2  ;;  %v1224_v1 = vunpack.c.l.bf16 %v1223_v60  ;;  %v1225_v2 = vunpack.c.h.bf16 %v1223_v60 }
  0xcf   :  { %1306 = vmatprep.subr.bf16.mxu1 %v1453_v3 }
  0xd1   :  { %1285 = vmatpush3.bf16.msra.mxu0 %v1454_v4 }
  0xd2   :  { %1307 = vmatpush3.bf16.msra.mxu1 %v1455_v5  ;;  %1332 = vmatprep.subr.bf16.mxu0 %v1696_v13 }
  0xd3   :  { %1352 = vmatprep.subr.bf16.mxu1 %v1696_v13 }
  0xd4   :  { %796 = vmatmul.mubr.bf16.vlgmr.msra.gmra.mrb[4].mxu0 %v1136_v7  ;;  %v1474_v7 = vld [vmem:[#allocation13 + $0x30] sm:$0xff]  }
  0xd5   :  { %836 = vmatmul.mubr.bf16.vlgmr.msra.gmra.mrb[4].mxu1 %v1138_v10  ;;  %1333 = vmatpush3.bf16.msra.mxu0 %v1460_v12 }
  0xd6   :  { %1334 = vmatprep.subr.bf16.mxu0 %v1696_v13  ;;  %1348 = vmatprep.mubr.msk.bf16.mxu0 %vm1697_vm0, %v1696_v13 }
  0xd7   :  { %1368 = vmatprep.mubr.msk.bf16.mxu1 %vm1697_vm0, %v1696_v13  ;;  %1353 = vmatpush3.bf16.msra.mxu1 %v1468_v21 }
  0xd8   :  { %1354 = vmatprep.subr.bf16.mxu1 %v1696_v13 }
  0xd9   :  { %1335 = vmatpush3.bf16.msra.mxu0 %v1461_v14 }
  0xda   :  { %1336 = vmatprep.subr.bf16.mxu0 %v1696_v13 }
  0xdb   :  { %1355 = vmatpush3.bf16.msra.mxu1 %v1469_v22 }
  0xdc   :  { %1356 = vmatprep.subr.bf16.mxu1 %v1696_v13 }
  0xdd   :  { %1337 = vmatpush3.bf16.msra.mxu0 %v1462_v15 }
  0xde   :  { %1338 = vmatprep.subr.bf16.mxu0 %v1696_v13 }
  0xdf   :  { %1357 = vmatpush3.bf16.msra.mxu1 %v1470_v23 }
  0xe0   :  { %1358 = vmatprep.subr.bf16.mxu1 %v1696_v13 }
  0xe1   :  { %1339 = vmatpush3.bf16.msra.mxu0 %v1463_v16 }
  0xe2   :  { %1340 = vmatprep.subr.bf16.mxu0 %v1696_v13 }
  0xe3   :  { %1359 = vmatpush3.bf16.msra.mxu1 %v1471_v24 }
  0xe4   :  { %1360 = vmatprep.subr.bf16.mxu1 %v1696_v13 }
  0xe5   :  { %1341 = vmatpush3.bf16.msra.mxu0 %v1464_v17 }
  0xe6   :  { %1342 = vmatprep.subr.bf16.mxu0 %v1696_v13 }
  0xe7   :  { %1361 = vmatpush3.bf16.msra.mxu1 %v1472_v25 }
  0xe8   :  { %1362 = vmatprep.subr.bf16.mxu1 %v1696_v13 }
  0xe9   :  { %1343 = vmatpush3.bf16.msra.mxu0 %v1465_v18  ;;  %v1213_v18 = vld [vmem:[#allocation14] ss:$0 sm:$0xff] }
  0xea   :  { %1344 = vmatprep.subr.bf16.mxu0 %v1696_v13 }
  0xeb   :  { %1363 = vmatpush3.bf16.msra.mxu1 %v1473_v26 }
  0xec   :  { %1364 = vmatprep.subr.bf16.mxu1 %v1696_v13 }
  0xed   :  { %1345 = vmatpush3.bf16.msra.mxu0 %v1466_v19 }
  0xee   :  { %1346 = vmatprep.subr.bf16.mxu0 %v1696_v13 }
  0xef   :  { %1365 = vmatpush3.bf16.msra.mxu1 %v1474_v7 }
  0xf0   :  { %1366 = vmatprep.subr.bf16.mxu1 %v1696_v13 }
  0xf1   :  { %1347 = vmatpush3.bf16.msra.mxu0 %v1467_v20 }
  0xf3   :  { %1367 = vmatpush3.bf16.msra.mxu1 %v1475_v8 }
 0x187   :  { %v1242_v27 = vpop.f32.mrb[0].mxu0 }
 0x188   :  { %v1264_v28 = vpop.f32.mrb[0].mxu1  ;;  %v1243_v30 = vpop.f32.mrb[1].mxu0 }
 0x189   :  { %v1265_v31 = vpop.f32.mrb[1].mxu1  ;;  %v1244_v32 = vadd.f32 %v1243_v30, %v1242_v27  ;;  %v1245_v34 = vpop.f32.mrb[2].mxu0 }
 0x18a   :  { %v1266_v33 = vadd.f32 %v1265_v31, %v1264_v28  ;;  %v1267_v35 = vpop.f32.mrb[2].mxu1  ;;  %v1246_v36 = vpop.f32.mrb[3].mxu0 }
 0x18b   :  { %v1268_v37 = vpop.f32.mrb[3].mxu1  ;;  %v718_v38 = vadd.f32 %v1244_v32, %v1131_v29 }
 0x18d   :  { %v758_v39 = vadd.f32 %v1266_v33, %v718_v38 }
 0x1a7   :  { %v1286_v43 = vpop.f32.mrb[4].mxu0 }
 0x1a8   :  { %v1308_v44 = vpop.f32.mrb[4].mxu1  ;;  %v1287_v47 = vpop.f32.mrb[5].mxu0 }
 0x1a9   :  { %v1309_v48 = vpop.f32.mrb[5].mxu1  ;;  %v1288_v49 = vadd.f32 %v1287_v47, %v1286_v43  ;;  %v1289_v51 = vpop.f32.mrb[6].mxu0 }
 0x1aa   :  { %v1310_v50 = vadd.f32 %v1309_v48, %v1308_v44  ;;  %v1311_v52 = vpop.f32.mrb[6].mxu1  ;;  %v1290_v53 = vpop.f32.mrb[7].mxu0 }
 0x1ab   :  { %v1312_v54 = vpop.f32.mrb[7].mxu1  ;;  %v798_v55 = vadd.f32 %v1288_v49, %v758_v39 }
 0x1ad   :  { %v838_v57 = vadd.f32 %v1310_v50, %v798_v55 }
 0x1af   :  { %v854_v58 = vrot.slane %v838_v57, %v853_v56 }
 0x1b1   :  { %v855_v61 = vcombine.high %v854_v58, %v854_v58  ;;  %v862_v62 = vrot.slane %v854_v58, %v853_v56 }
 0x1b3   :  { %v869_v63 = vrot.slane %v855_v61, %v853_v56  ;;  %v873_v0 = vrot.slane %v862_v62, %v872_v59 }
 0x1b5   :  { %v877_v3 = vrot.slane %v869_v63, %v872_v59  ;;  %v880_v4 = vadd.f32 %v1224_v1, %v873_v0 }
 0x1b7   :  { %v881_v5 = vadd.f32 %v1225_v2, %v877_v3 }
 0x1b9   :  { %v882_v6 = vpack.c.bf16 %v881_v5, %v880_v4 }
 0x1bb   :  { %1349 = vmatmul.mubr.bf16.vlgmr.msra.gmra.mrb[8].mxu0 %v882_v6 }
 0x28e   :  { %v988_v10 = vpop.f32.mrb[8].mxu0 }
 0x28f   :  { %v1350_v11 = vpop.f32.mrb[9].mxu0  ;;  %v989_v14 = vadd.f32 %v1204_v9, %v988_v10 }
 0x290   :  { %v991_v12 = vpop.f32.mrb[10].mxu0 }
 0x291   :  { %v992_v15 = vadd.f32 %v1204_v9, %v991_v12  ;;  %v1351_v16 = vpop.f32.mrb[11].mxu0 }
 0x293   :  { %v995_v17 = vpack.c.bf16 %v992_v15, %v989_v14 }
 0x295   :  { %1369 = vmatmul.mubr.bf16.vlgmr.msra.gmra.mrb[8].mxu1 %v995_v17 }
 0x368   :  { %v1101_v19 = vpop.f32.mrb[8].mxu1 }
 0x369   :  { %v1102_v20 = vadd.f32 %v1213_v18, %v1101_v19  ;;  %v1370_v21 = vpop.f32.mrb[9].mxu1 }
 0x36a   :  { %v1104_v22 = vpop.f32.mrb[10].mxu1 }
 0x36b   :  { %1108 = vst [vmem:[#allocation16] sm:$0xff] %v1102_v20  ;;  %v1105_v13 = vadd.f32 %v1213_v18, %v1104_v22  ;;  %v1371_v23 = vpop.f32.mrb[11].mxu1 }
 0x36d   :  { %1109 = vst [vmem:[#allocation16 + $0x8] sm:$0xff] %v1105_v13 }
 0x36e   :  { %1663 = shalt.err (!%p1660_p12)
}
 0x36f   :  { %s1664_s26 = scalar_lea.hbm %s1893_s8, 256 }
 0x370   :  { %p1665_p13 = scmp.ne.s32.totalorder %s1893_s8, %s1664_s26  ;;  %p1668_p0 = scmp.lt.u32.totalorder %s1664_s26, %s1893_s8 }
 0x372   :  { %p1670_p1 = pnand %p1668_p0, %p1665_p13 }
 0x374   :  { %1673 = shalt.err (!%p1670_p1)
}
 0x375   :  { %s1700_s17 = smov 128   ;;  %s1701_s18 = smov 8  }
 0x376   :  { %1121 = dma.vmem_to_hbm [thread:$0]  %s1116_s29, 256, %s1893_s8, [#allocation4], %s1700_s17, %s1700_s17, %s1701_s18  }
 0x377   :  { %1684 = dma.done.wait [#allocation4], 256  }
 0x378   :  { %1685 = vsyncadd [#allocation4], 4294967040 }
 0x379   :  { %1125 = vsyncpa [#allocation3], 1 }
 0x37a   :  { %1126 = vsyncpa [#allocation6], 1 }
 0x37b   :  { %1127 = vsyncpa [#allocation9], 1 }
 0x37c   :  { %1128 = vsyncpa [#allocation12], 1 }
 0x37d   :  { %1129 = vsyncpa [#allocation15], 1 }
 0x37e   :  { %1130 = vsyncpa [#allocation4], 1 }

</bundles_post_ra>
